<compile_context>
chip_gen: v7x
topology: tpu7x:2x2x1
jax: 0.10.0
libtpu: 0.0.40
codegen_flags: <defaults>
</compile_context>

<pallas_src>
import jax
import jax.numpy as jnp
from jax import lax
from jax.experimental import pallas as pl
from jax.experimental.pallas import tpu as pltpu

SUCCESS_WEIGHT = 1.0

_LANE = 128
_MAX_TILE_ROWS = 1024  # 1024x128 f32 block = 512 KiB; 2 inputs x 2 buffers = 2 MiB VMEM


def _sublane_multiple(dtype) -> int:
    # sublane packing granularity: f32 -> 8, bf16 -> 16, 8-bit -> 32
    return max(8, 32 // jnp.dtype(dtype).itemsize)


def _make_kernel(tile_rows, rows, need_mask, weight):
    def kernel(xa_ref, xb_ref, out_ref):
        p = pl.program_id(0)        # parallel slot (TensorCore on v7x)
        j = pl.program_id(1)        # reduction step within the slot
        nj = pl.num_programs(1)

        @pl.when(j == 0)
        def _init():
            out_ref[...] = jnp.zeros_like(out_ref)

        diff = xb_ref[...].astype(jnp.float32) - xa_ref[...].astype(jnp.float32)
        sq = diff * diff

        if need_mask:
            # zero contributions from rows past the logical end of the data
            # (partial last block / phantom blocks of the parallel split).
            row_start = (p * nj + j) * tile_rows
            row_ids = lax.broadcasted_iota(jnp.int32, (tile_rows, _LANE), 0)
            sq = jnp.where(row_ids + row_start < rows, sq, jnp.float32(0.0))

        # Per-step partial reduce: (tile_rows,128) -> (8,128) via VALU adds only.
        out_ref[...] += jnp.sum(sq.reshape(tile_rows // 8, 8, _LANE), axis=0)

        @pl.when(j == nj - 1)
        def _finalize():
            out_ref[...] = -out_ref[...] * jnp.float32(weight)

    return kernel


def reward_calculator_mse(points, decoded_points, success_weight=SUCCESS_WEIGHT):
    """Pallas equivalent of RewardCalculatorMSE.forward.

    points: tuple (x_a, labels)  (labels unused, matching the PyTorch module)
    decoded_points: x_b, same shape as x_a
    Returns {'total_reward': scalar} with
      total_reward = -sum((x_b - x_a)**2) * success_weight
    """
    x_a, _ = points
    x_b = decoded_points
    assert x_a.shape == x_b.shape

    n = x_a.size
    sub = max(_sublane_multiple(x_a.dtype), _sublane_multiple(x_b.dtype))
    rows = pl.cdiv(n, _LANE)
    rows = ((rows + sub - 1) // sub) * sub      # sublane-aligned row count
    padded = rows * _LANE

    def as_2d(x):
        xf = jnp.ravel(x)                       # native dtype, no upcast
        if padded != n:                         # pad only if not lane-aligned
            xf = jnp.pad(xf, (0, padded - n))   # zero pad -> zero contribution
        return xf.reshape(rows, _LANE)

    xa2d = as_2d(x_a)
    xb2d = as_2d(x_b)

    tile_rows = min(_MAX_TILE_ROWS, rows)       # multiple of `sub`, <= rows
    nb = pl.cdiv(rows, tile_rows)               # total row-blocks
    num_parallel = 2 if nb >= 2 else 1          # v7x: use both TensorCores
    bph = pl.cdiv(nb, num_parallel)             # blocks per parallel slot

    need_mask = (rows % tile_rows != 0) or (num_parallel * bph != nb)

    def in_map(p, j):
        blk = p * bph + j
        if num_parallel * bph != nb:            # clamp phantom blocks (masked anyway)
            blk = jnp.minimum(blk, nb - 1)
        return (blk, 0)

    kernel = _make_kernel(tile_rows, rows, need_mask, success_weight)

    bytes_per_elem = (jnp.dtype(x_a.dtype).itemsize + jnp.dtype(x_b.dtype).itemsize)
    cost = pl.CostEstimate(
        flops=3 * n,
        transcendentals=0,
        bytes_accessed=n * bytes_per_elem + num_parallel * 8 * _LANE * 4,
    )

    partials = pl.pallas_call(
        kernel,
        out_shape=jax.ShapeDtypeStruct((num_parallel * 8, _LANE), jnp.float32),
        grid_spec=pltpu.PrefetchScalarGridSpec(
            num_scalar_prefetch=0,
            grid=(num_parallel, bph),
            in_specs=[
                pl.BlockSpec((tile_rows, _LANE), in_map),
                pl.BlockSpec((tile_rows, _LANE), in_map),
            ],
            out_specs=pl.BlockSpec((8, _LANE), lambda p, j: (p, 0)),
        ),
        compiler_params=pltpu.CompilerParams(
            dimension_semantics=("parallel", "arbitrary"),
        ),
        cost_estimate=cost,
    )(xa2d, xb2d)

    # Partials are already negated & weighted per slot; tiny final sum in XLA.
    return {"total_reward": jnp.sum(partials)}


if __name__ == "__main__":
    key = jax.random.PRNGKey(0)
    k1, k2, k3 = jax.random.split(key, 3)

    # SMALL NCHW-shaped "points": batch=2, channels=4, spatial=16
    x_a = jax.random.normal(k1, (2, 4, 16, 16), dtype=jnp.float32)
    labels = jax.random.randint(k3, (2,), 0, 10)  # unused, mirrors (x, y) tuple
    x_b = jax.random.normal(k2, (2, 4, 16, 16), dtype=jnp.float32)

    result = reward_calculator_mse((x_a, labels), x_b)
    total_reward = jax.block_until_ready(result["total_reward"])

    # reference check (plain JAX)
    ref = -jnp.sum((x_b - x_a) ** 2) * SUCCESS_WEIGHT
    assert jnp.allclose(total_reward, ref, rtol=1e-5, atol=1e-5), (total_reward, ref)

    print("KERNEL_OK")
</pallas_src>

<mosaic_0001>
module attributes {stable_mosaic.version = 11 : i64} {
  func.func @kernel(%arg0: i32, %arg1: i32, %arg2: memref<16x128xf32, #tpu.memory_space<vmem>>, %arg3: memref<16x128xf32, #tpu.memory_space<vmem>>, %arg4: memref<8x128xf32, #tpu.memory_space<vmem>>) attributes {dimension_semantics = [#tpu.dimension_semantics<parallel>, #tpu.dimension_semantics<arbitrary>], iteration_bounds = array<i64: 1, 1>, scalar_prefetch = 0 : i64, scratch_operands = 0 : i64, tpu.core_type = #tpu.core_type<tc>, window_params = [{transform_indices = @transform_0, window_bounds = array<i64: 16, 128>}, {transform_indices = @transform_1, window_bounds = array<i64: 16, 128>}, {transform_indices = @transform_2, window_bounds = array<i64: 8, 128>}]} {
    %c0_i32 = arith.constant 0 : i32
    %0 = arith.cmpi eq, %arg1, %c0_i32 : i32
    %1 = arith.extui %0 : i1 to i32
    %c0_i32_0 = arith.constant 0 : i32
    %2 = arith.cmpi ne, %1, %c0_i32_0 : i32
    scf.if %2 {
      %cst_10 = arith.constant 0.000000e+00 : f32
      %15 = vector.broadcast %cst_10 : f32 to vector<8x128xf32>
      %c0_11 = arith.constant 0 : index
      %c0_12 = arith.constant 0 : index
      %16 = vector.load %arg4[%c0_11, %c0_12] : memref<8x128xf32, #tpu.memory_space<vmem>>, vector<8x128xf32>
      tpu.vector_store %arg4[%c0_11, %c0_12], %15 {strides = array<i32>} : memref<8x128xf32, #tpu.memory_space<vmem>>, vector<8x128xf32>,
    } else {
    }
    %c0 = arith.constant 0 : index
    %c0_1 = arith.constant 0 : index
    %3 = vector.load %arg3[%c0, %c0_1] : memref<16x128xf32, #tpu.memory_space<vmem>>, vector<16x128xf32>
    %c0_2 = arith.constant 0 : index
    %c0_3 = arith.constant 0 : index
    %4 = vector.load %arg2[%c0_2, %c0_3] : memref<16x128xf32, #tpu.memory_space<vmem>>, vector<16x128xf32>
    %5 = arith.subf %3, %4 : vector<16x128xf32>
    %6 = arith.mulf %5, %5 : vector<16x128xf32>
    %c0_4 = arith.constant 0 : index
    %c0_5 = arith.constant 0 : index
    %7 = vector.load %arg4[%c0_4, %c0_5] : memref<8x128xf32, #tpu.memory_space<vmem>>, vector<8x128xf32>
    %8 = vector.shape_cast %6 : vector<16x128xf32> to vector<2x8x128xf32>
    %cst = arith.constant dense<0.000000e+00> : vector<8x128xf32>
    %9 = vector.multi_reduction <add>, %8, %cst [0] : vector<2x8x128xf32> to vector<8x128xf32>
    %10 = arith.addf %7, %9 : vector<8x128xf32>
    %c0_6 = arith.constant 0 : index
    %c0_7 = arith.constant 0 : index
    %11 = vector.load %arg4[%c0_6, %c0_7] : memref<8x128xf32, #tpu.memory_space<vmem>>, vector<8x128xf32>
    tpu.vector_store %arg4[%c0_6, %c0_7], %10 {strides = array<i32>} : memref<8x128xf32, #tpu.memory_space<vmem>>, vector<8x128xf32>,
    %c0_i32_8 = arith.constant 0 : i32
    %12 = arith.cmpi eq, %arg1, %c0_i32_8 : i32
    %13 = arith.extui %12 : i1 to i32
    %c0_i32_9 = arith.constant 0 : i32
    %14 = arith.cmpi ne, %13, %c0_i32_9 : i32
    scf.if %14 {
      %c0_10 = arith.constant 0 : index
      %c0_11 = arith.constant 0 : index
      %15 = vector.load %arg4[%c0_10, %c0_11] : memref<8x128xf32, #tpu.memory_space<vmem>>, vector<8x128xf32>
      %cst_12 = arith.constant 0.000000e+00 : f32
      %16 = vector.broadcast %cst_12 : f32 to vector<8x128xf32>
      %17 = arith.subf %16, %15 : vector<8x128xf32>
      %cst_13 = arith.constant 1.000000e+00 : f32
      %18 = vector.broadcast %cst_13 : f32 to vector<8x128xf32>
      %19 = arith.mulf %17, %18 : vector<8x128xf32>
      %c0_14 = arith.constant 0 : index
      %c0_15 = arith.constant 0 : index
      %20 = vector.load %arg4[%c0_14, %c0_15] : memref<8x128xf32, #tpu.memory_space<vmem>>, vector<8x128xf32>
      tpu.vector_store %arg4[%c0_14, %c0_15], %19 {strides = array<i32>} : memref<8x128xf32, #tpu.memory_space<vmem>>, vector<8x128xf32>,
    } else {
    }
    return
  }
  func.func @transform_0(%arg0: i32, %arg1: i32) -> (i32, i32) {
    %c1_i32 = arith.constant 1 : i32
    %0 = arith.muli %arg0, %c1_i32 : i32
    %1 = arith.addi %0, %arg1 : i32
    %c0_i32 = arith.constant 0 : i32
    %c0_i32_0 = arith.constant 0 : i32
    return %1, %c0_i32 : i32, i32
  }
  func.func @transform_1(%arg0: i32, %arg1: i32) -> (i32, i32) {
    %c1_i32 = arith.constant 1 : i32
    %0 = arith.muli %arg0, %c1_i32 : i32
    %1 = arith.addi %0, %arg1 : i32
    %c0_i32 = arith.constant 0 : i32
    %c0_i32_0 = arith.constant 0 : i32
    return %1, %c0_i32 : i32, i32
  }
  func.func @transform_2(%arg0: i32, %arg1: i32) -> (i32, i32) {
    %c0_i32 = arith.constant 0 : i32
    %c0_i32_0 = arith.constant 0 : i32
    return %arg0, %c0_i32 : i32, i32
  }
}

</mosaic_0001>

<bundles_post_ra>
// kernel: tpu_custom_call.1
= control target key start
LH: loop header
LB: loop body
LE: loop exit
PB: predicated region body
PF: predicated region fallthrough
CT: control target
= control target key end

     0   :  { %7 = vsyncpa [#allocation3], 0  ;;  %s225_s0 = inlined_call_operand.hbm [shape: f32[16,128], index: 0, kind: input, shape index: {}]   ;;  %s226_s1 = inlined_call_operand.hbm [shape: f32[16,128], index: 1, kind: input, shape index: {}]   ;;  %s227_s2 = inlined_call_operand.hbm [shape: f32[8,128], index: 2, kind: output, shape index: {}]  }
   0x1   :  { %8 = vsyncpa [#allocation6], 0 }
   0x2   :  { %9 = vsyncpa [#allocation4], 0  ;;  %s169_s9 = smov [#allocation2]   ;;  %s97_s13 = scalar_lea.hbm %s225_s0, 256 }
   0x3   :  { %s19_s10 = sshll.u32 %s169_s9, 4  ;;  %p98_p0 = scmp.ne.s32.totalorder %s225_s0, %s97_s13  ;;  %s20_s10 = int_to_ptr.vmem [resolvable:$true] %s19_s10 }
   0x4   :  { %p101_p1 = scmp.lt.u32.totalorder %s97_s13, %s225_s0 }
   0x6   :  { %p103_p2 = pnand %p101_p1, %p98_p0 }
   0x8   :  { %106 = shalt.err (!%p103_p2)
}
   0x9   :  { %s107_s18 = scalar_lea.vmem %s20_s10, 256  ;;  %p112_p4 = scmp.lt.s32.totalorder %s20_s10, %s20_s10 }
   0xa   :  { %p108_p3 = scmp.ne.s32.totalorder %s20_s10, %s107_s18  ;;  %p113_p5 = scmp.lt.s32.totalorder %s107_s18, %s107_s18 }
   0xc   :  { %p114_p6 = por %p113_p5, %p112_p4 }
   0xe   :  { %p115_p7 = pnand %p114_p6, %p108_p3 }
  0x10   :  { %118 = shalt.err (!%p115_p7)
}
  0x11   :  { %s170_s19 = smov 128   ;;  %s171_s20 = smov 8  }
  0x12   :  { %25 = dma.hbm_to_vmem [thread:$0]  %s225_s0, 256, %s20_s10, [#allocation3], %s170_s19, %s170_s19, %s171_s20  }
  0x13   :  { %s172_s23 = smov [#allocation5]   ;;  %s119_s27 = scalar_lea.hbm %s226_s1, 256 }
  0x14   :  { %s35_s24 = sshll.u32 %s172_s23, 4  ;;  %p120_p8 = scmp.ne.s32.totalorder %s226_s1, %s119_s27  ;;  %s36_s24 = int_to_ptr.vmem [resolvable:$true] %s35_s24 }
  0x15   :  { %p123_p9 = scmp.lt.u32.totalorder %s119_s27, %s226_s1 }
  0x17   :  { %p125_p10 = pnand %p123_p9, %p120_p8 }
  0x19   :  { %128 = shalt.err (!%p125_p10)
}
  0x1a   :  { %s129_s4 = scalar_lea.vmem %s36_s24, 256  ;;  %p134_p12 = scmp.lt.s32.totalorder %s36_s24, %s36_s24 }
  0x1b   :  { %p130_p11 = scmp.ne.s32.totalorder %s36_s24, %s129_s4  ;;  %p135_p13 = scmp.lt.s32.totalorder %s129_s4, %s129_s4 }
  0x1d   :  { %p136_p0 = por %p135_p13, %p134_p12 }
  0x1f   :  { %p137_p1 = pnand %p136_p0, %p130_p11 }
  0x21   :  { %140 = shalt.err (!%p137_p1)
}
  0x22   :  { %41 = dma.hbm_to_vmem [thread:$0]  %s226_s1, 256, %s36_s24, [#allocation6], %s170_s19, %s170_s19, %s171_s20  }
  0x23   :  { %163 = dma.done.wait [#allocation3], 256  }
  0x24   :  { %164 = vsyncadd [#allocation3], 4294967040 }
  0x25   :  { %165 = dma.done.wait [#allocation6], 256  }
  0x26   :  { %166 = vsyncadd [#allocation6], 4294967040  ;;  %v57_v0 = vld [vmem:[#allocation5] sm:$0xff]  ;;  %v58_v1 = vld [vmem:[#allocation5 + $0x8] sm:$0xff]  ;;  %s173_s6 = smov [#allocation7]  }
  0x27   :  { %v59_v2 = vld [vmem:[#allocation2] sm:$0xff]  ;;  %v60_v3 = vld [vmem:[#allocation2 + $0x8] sm:$0xff]  ;;  %s81_s7 = sshll.u32 %s173_s6, 4  ;;  %s82_s7 = int_to_ptr.vmem [resolvable:$true] %s81_s7 }
  0x28   :  { %v61_v4 = vsub.f32 %v57_v0, %v59_v2  ;;  %v62_v5 = vsub.f32 %v58_v1, %v60_v3  ;;  %s141_s8 = scalar_lea.vmem %s82_s7, 128  ;;  %p146_p3 = scmp.lt.s32.totalorder %s82_s7, %s82_s7 }
  0x29   :  { %p142_p2 = scmp.ne.s32.totalorder %s82_s7, %s141_s8  ;;  %p147_p4 = scmp.lt.s32.totalorder %s141_s8, %s141_s8 }
  0x2a   :  { %v63_v6 = vmul.f32 %v61_v4, %v61_v4  ;;  %v64_v7 = vmul.f32 %v62_v5, %v62_v5 }
  0x2b   :  { %p148_p5 = por %p147_p4, %p146_p3 }
  0x2c   :  { %v66_v8 = vadd.f32 %v64_v7, %v63_v6 }
  0x2d   :  { %p149_p6 = pnand %p148_p5, %p142_p2 }
  0x2e   :  { %v73_v9 = vsub.f32 0.0, %v66_v8 }
  0x30   :  { %74 = vst [vmem:[#allocation7] sm:$0xff] %v73_v9 }
  0x31   :  { %152 = shalt.err (!%p149_p6)
}
  0x32   :  { %s153_s10 = scalar_lea.hbm %s227_s2, 128 }
  0x33   :  { %p154_p7 = scmp.ne.s32.totalorder %s227_s2, %s153_s10  ;;  %p157_p8 = scmp.lt.u32.totalorder %s153_s10, %s227_s2 }
  0x35   :  { %p159_p9 = pnand %p157_p8, %p154_p7 }
  0x37   :  { %162 = shalt.err (!%p159_p9)
}
  0x38   :  { %84 = dma.vmem_to_hbm [thread:$0]  %s82_s7, 128, %s227_s2, [#allocation4]  }
  0x39   :  { %167 = dma.done.wait [#allocation4], 128  }
  0x3a   :  { %168 = vsyncadd [#allocation4], 4294967168 }
  0x3b   :  { %88 = vsyncpa [#allocation3], 1 }
  0x3c   :  { %89 = vsyncpa [#allocation6], 1 }
  0x3d   :  { %90 = vsyncpa [#allocation4], 1 }

</bundles_post_ra>
